<compile_context>
chip_gen: v6e
topology: v6e:2x2x1
jax: 0.10.0
libtpu: 0.0.40
codegen_flags: <defaults>
</compile_context>

<pallas_src>
import functools

import jax
import jax.numpy as jnp
from jax.experimental import pallas as pl
from jax.experimental.pallas import tpu as pltpu


# --------------------------------------------------------------------------- #
# Kernels
# --------------------------------------------------------------------------- #
def _resident_kernel(x_ref, w_ref, b_ref, o_ref):
    # x_ref: (tile_r, D)   w_ref: (V, D) resident   b_ref: (1, V) f32
    logits = jax.lax.dot_general(
        x_ref[...], w_ref[...],
        dimension_numbers=(((1,), (1,)), ((), ())),      # x @ W^T, no HBM transpose
        preferred_element_type=jnp.float32)              # MXU, f32 accumulation
    logits = logits + b_ref[...].astype(jnp.float32)
    m = jnp.max(logits, axis=-1, keepdims=True)
    z = logits - m
    lse = jnp.log(jnp.sum(jnp.exp(z), axis=-1, keepdims=True))
    o_ref[...] = (z - lse).astype(o_ref.dtype)


def _tiled_kernel(x_ref, w_ref, b_ref, o_ref, logits_ref, m_ref, l_ref, *,
                  nv, tile_v):
    # Grid: (row tiles [parallel], vocab tiles [arbitrary, last]).
    # x_ref: (tile_r, D) constant across j     w_ref: (tile_v, D) streamed
    # b_ref: (1, tile_v) f32                   o_ref: (tile_r, V), written at last j
    # logits_ref: (nv, tile_r, tile_v) f32 scratch; m_ref/l_ref: (tile_r, 1) f32
    j = pl.program_id(1)

    @pl.when(j == 0)
    def _():
        m_ref[...] = jnp.full_like(m_ref, -jnp.inf)
        l_ref[...] = jnp.zeros_like(l_ref)

    logits = jax.lax.dot_general(
        x_ref[...], w_ref[...],
        dimension_numbers=(((1,), (1,)), ((), ())),
        preferred_element_type=jnp.float32)
    logits = logits + b_ref[...].astype(jnp.float32)

    logits_ref[j] = logits                       # keep raw f32 logits for 2nd pass

    m_prev = m_ref[...]
    m_new = jnp.maximum(m_prev, jnp.max(logits, axis=-1, keepdims=True))
    l_ref[...] = (l_ref[...] * jnp.exp(m_prev - m_new)
                  + jnp.sum(jnp.exp(logits - m_new), axis=-1, keepdims=True))
    m_ref[...] = m_new

    @pl.when(j == nv - 1)
    def _():
        lse = m_ref[...] + jnp.log(l_ref[...])
        for jj in range(nv):                     # nv is a static Python int
            o_ref[:, jj * tile_v:(jj + 1) * tile_v] = (
                logits_ref[jj] - lse).astype(o_ref.dtype)


# --------------------------------------------------------------------------- #
# Tiling policy
# --------------------------------------------------------------------------- #
def _sublane(itemsize):
    return {1: 32, 2: 16}.get(itemsize, 8)


def _round_up(n, m):
    return -(-n // m) * m


def _vmem_capacity_bytes():
    cap = 64 << 20  # conservative default == v7x per-TensorCore VMEM
    try:
        info = pltpu.get_tpu_info()
        cap = int(getattr(info, "vmem_capacity_bytes", cap))
    except Exception:
        pass
    return cap


def _plan(R, D, V, x_item, w_item, out_item, budget):
    """Pick (path, tile_r, tile_v) so the estimated VMEM footprint <= budget."""
    f32 = 4
    sub = _sublane(x_item)
    r_cap = _round_up(max(R, 1), sub)

    # ---- fully-resident-W path (small / medium projection heads) ------------
    w_resident = 2 * V * D * w_item + 2 * V * f32            # W + bias, 2 buffers
    per_row_res = 2 * D * x_item + 2 * V * out_item + 3 * V * f32
    t_floor = min(r_cap, 256)                                 # keep the MXU M dim fed
    if w_resident + t_floor * per_row_res <= budget:
        t = (budget - w_resident) // per_row_res
        t = max(t_floor, (t // sub) * sub)
        return "resident", int(min(t, r_cap, 1024)), V

    # ---- vocab-tiled path: stream W, resident (tile_r, V) f32 logits scratch
    tile_v = V
    if V % 128 == 0:
        tile_v = 128
        for c in (2048, 1024, 512, 256):
            if V % c == 0 and 2 * c * (D * w_item + f32) <= budget // 3:
                tile_v = c
                break
    fixed = 2 * tile_v * (D * w_item + f32)                   # streamed W tile + bias
    per_row = (V * f32                                        # f32 logits scratch
               + 2 * V * out_item                             # output block (2 bufs)
               + 2 * D * x_item                               # x tile (2 bufs)
               + 3 * tile_v * f32                             # per-step f32 temps
               + 2 * 128 * f32)                               # running max / sum
    t = (budget - fixed) // per_row if budget > fixed else 0
    t = max(sub, (t // sub) * sub)
    # TODO(synk): for vocab so huge that even tile_r==sublane overflows the budget,
    #             spill the logits scratch to HBM (true two-pass) instead.
    return "tiled", int(min(t, r_cap, 512)), int(tile_v)


# --------------------------------------------------------------------------- #
# Wrapper
# --------------------------------------------------------------------------- #
def projection_layer(x, weight, bias, *, vmem_budget_bytes=None):
    """x: (..., d_model); weight: (vocab, d_model) (PyTorch Linear layout);
    bias: (vocab,).  Returns log_softmax(x @ weight.T + bias, axis=-1)."""
    orig_shape = x.shape
    D = orig_shape[-1]
    V = weight.shape[0]

    x2 = x.reshape(-1, D)
    R = x2.shape[0]

    if weight.dtype != x.dtype:          # keep both MXU operands in one dtype
        weight = weight.astype(x.dtype)
    b2 = jnp.asarray(bias, dtype=jnp.float32).reshape(1, V)

    x_item = jnp.dtype(x.dtype).itemsize
    w_item = jnp.dtype(weight.dtype).itemsize
    out_dtype = x.dtype
    out_item = jnp.dtype(out_dtype).itemsize

    cap = _vmem_capacity_bytes()
    budget = int(vmem_budget_bytes) if vmem_budget_bytes is not None else int(cap * 0.70)
    vmem_limit = int(min(cap, max(int(cap * 0.85), budget)))

    path, tile_r, tile_v = _plan(R, D, V, x_item, w_item, out_item, budget)
    n_row_tiles = pl.cdiv(R, tile_r)

    cost = pl.CostEstimate(
        flops=2 * R * D * V,
        transcendentals=R * V,
        bytes_accessed=int(R * D * x_item
                           + (1 if path == "resident" else n_row_tiles) * V * D * w_item
                           + V * 4 + R * V * out_item))

    if path == "resident":
        out = pl.pallas_call(
            _resident_kernel,
            out_shape=jax.ShapeDtypeStruct((R, V), out_dtype),
            grid=(n_row_tiles,),
            in_specs=[
                pl.BlockSpec((tile_r, D), lambda i: (i, 0)),   # streamed rows
                pl.BlockSpec((V, D), lambda i: (0, 0)),        # resident W (PyTorch layout)
                pl.BlockSpec((1, V), lambda i: (0, 0)),        # resident bias (f32)
            ],
            out_specs=pl.BlockSpec((tile_r, V), lambda i: (i, 0)),
            compiler_params=pltpu.CompilerParams(
                dimension_semantics=("parallel",),
                vmem_limit_bytes=vmem_limit),
            cost_estimate=cost,
        )(x2, weight, b2)
    else:
        nv = V // tile_v
        kernel = functools.partial(_tiled_kernel, nv=nv, tile_v=tile_v)
        out = pl.pallas_call(
            kernel,
            out_shape=jax.ShapeDtypeStruct((R, V), out_dtype),
            grid=(n_row_tiles, nv),
            in_specs=[
                pl.BlockSpec((tile_r, D), lambda i, j: (i, 0)),   # fetched once per row tile
                pl.BlockSpec((tile_v, D), lambda i, j: (j, 0)),   # streamed W tiles
                pl.BlockSpec((1, tile_v), lambda i, j: (0, j)),   # bias tile (f32)
            ],
            out_specs=pl.BlockSpec((tile_r, V), lambda i, j: (i, 0)),
            scratch_shapes=[
                pltpu.VMEM((nv, tile_r, tile_v), jnp.float32),    # logits scratch
                pltpu.VMEM((tile_r, 1), jnp.float32),             # running max
                pltpu.VMEM((tile_r, 1), jnp.float32),             # running sum-exp
            ],
            compiler_params=pltpu.CompilerParams(
                dimension_semantics=("parallel", "arbitrary"),
                vmem_limit_bytes=vmem_limit),
            cost_estimate=cost,
        )(x2, weight, b2)

    return out.reshape(orig_shape[:-1] + (V,))


def projection_layer_ref(x, weight, bias):
    """Pure-JAX reference matching the PyTorch module."""
    logits = jnp.einsum("...d,vd->...v", x.astype(jnp.float32),
                        weight.astype(jnp.float32)) + bias.astype(jnp.float32)
    return jax.nn.log_softmax(logits, axis=-1).astype(x.dtype)


if __name__ == "__main__":
    key = jax.random.PRNGKey(0)
    k_x, k_w, k_b, k_x2, k_x3, k_w2, k_b2 = jax.random.split(key, 7)

    # -------- test 1: small shapes, resident-W path --------------------------
    batch, seq, d_model, vocab = 2, 8, 32, 64
    bound = 1.0 / (d_model ** 0.5)          # nn.Linear default init
    weight = jax.random.uniform(k_w, (vocab, d_model), jnp.float32, -bound, bound)
    bias = jax.random.uniform(k_b, (vocab,), jnp.float32, -bound, bound)

    x = jax.random.normal(k_x, (batch, seq, d_model), dtype=jnp.float32)
    out = projection_layer(x, weight, bias)
    jax.block_until_ready(out)
    ref = projection_layer_ref(x, weight, bias)
    assert out.shape == (batch, seq, vocab)
    assert jnp.max(jnp.abs(out - ref)) < 2e-5, "mismatch vs reference"

    # -------- test 2: ragged rows (R not a multiple of the row tile) ---------
    x_odd = jax.random.normal(k_x2, (3, 5, d_model), dtype=jnp.float32)
    out_odd = projection_layer(x_odd, weight, bias)
    jax.block_until_ready(out_odd)
    ref_odd = projection_layer_ref(x_odd, weight, bias)
    assert out_odd.shape == (3, 5, vocab)
    assert jnp.max(jnp.abs(out_odd - ref_odd)) < 2e-5, "mismatch vs reference (ragged)"

    # -------- test 3: force the vocab-tiled (online log-softmax) path --------
    vocab2 = 256
    weight2 = jax.random.uniform(k_w2, (vocab2, d_model), jnp.float32, -bound, bound)
    bias2 = jax.random.uniform(k_b2, (vocab2,), jnp.float32, -bound, bound)
    x_big = jax.random.normal(k_x3, (2, 10, d_model), dtype=jnp.float32)
    # tiny planning budget -> W "doesn't fit", exercises streamed-W / scratch path
    out_t = projection_layer(x_big, weight2, bias2, vmem_budget_bytes=128 << 10)
    jax.block_until_ready(out_t)
    ref_t = projection_layer_ref(x_big, weight2, bias2)
    assert out_t.shape == (2, 10, vocab2)
    assert jnp.max(jnp.abs(out_t - ref_t)) < 2e-5, "mismatch vs reference (tiled)"

    print("KERNEL_OK")
</pallas_src>

<mosaic_0001>
module attributes {stable_mosaic.version = 11 : i64} {
  func.func @_resident_kernel(%arg0: i32, %arg1: memref<16x32xf32, #tpu.memory_space<vmem>>, %arg2: memref<64x32xf32, #tpu.memory_space<vmem>>, %arg3: memref<1x64xf32, #tpu.memory_space<vmem>>, %arg4: memref<16x64xf32, #tpu.memory_space<vmem>>) attributes {dimension_semantics = [#tpu.dimension_semantics<parallel>], iteration_bounds = array<i64: 1>, scalar_prefetch = 0 : i64, scratch_operands = 0 : i64, tpu.core_type = #tpu.core_type<tc>, window_params = [{transform_indices = @transform_0, window_bounds = array<i64: 16, 32>}, {pipeline_mode = #tpu.pipeline_mode<synchronous>, transform_indices = @transform_1, window_bounds = array<i64: 64, 32>}, {pipeline_mode = #tpu.pipeline_mode<synchronous>, transform_indices = @transform_2, window_bounds = array<i64: 1, 64>}, {transform_indices = @transform_3, window_bounds = array<i64: 16, 64>}]} {
    %c0 = arith.constant 0 : index
    %c0_0 = arith.constant 0 : index
    %0 = vector.load %arg1[%c0, %c0_0] : memref<16x32xf32, #tpu.memory_space<vmem>>, vector<16x32xf32>
    %c0_1 = arith.constant 0 : index
    %c0_2 = arith.constant 0 : index
    %1 = vector.load %arg2[%c0_1, %c0_2] : memref<64x32xf32, #tpu.memory_space<vmem>>, vector<64x32xf32>
    %cst = arith.constant dense<0.000000e+00> : vector<16x64xf32>
    %2 = tpu.matmul %0, %1, %cst {dimension_numbers = #tpu.dot_dimension_numbers<[1], [1], [0], [0], [0, 0, 1, 0], [], []>} : vector<16x32xf32>, vector<64x32xf32>, vector<16x64xf32> -> vector<16x64xf32>
    %c0_3 = arith.constant 0 : index
    %c0_4 = arith.constant 0 : index
    %3 = vector.load %arg3[%c0_3, %c0_4] : memref<1x64xf32, #tpu.memory_space<vmem>>, vector<1x64xf32>
    %4 = vector.broadcast %3 : vector<1x64xf32> to vector<16x64xf32>
    %5 = arith.addf %2, %4 : vector<16x64xf32>
    %cst_5 = arith.constant dense<0xFF800000> : vector<16xf32>
    %6 = vector.multi_reduction <maximumf>, %5, %cst_5 [1] : vector<16x64xf32> to vector<16xf32>
    %7 = vector.shape_cast %6 : vector<16xf32> to vector<16x1xf32>
    %8 = vector.broadcast %7 : vector<16x1xf32> to vector<16x64xf32>
    %9 = arith.subf %5, %8 : vector<16x64xf32>
    %10 = math.exp %9 : vector<16x64xf32>
    %cst_6 = arith.constant dense<0.000000e+00> : vector<16xf32>
    %11 = vector.multi_reduction <add>, %10, %cst_6 [1] : vector<16x64xf32> to vector<16xf32>
    %12 = vector.shape_cast %11 : vector<16xf32> to vector<16x1xf32>
    %13 = math.log %12 : vector<16x1xf32>
    %14 = vector.broadcast %13 : vector<16x1xf32> to vector<16x64xf32>
    %15 = arith.subf %9, %14 : vector<16x64xf32>
    %c0_7 = arith.constant 0 : index
    %c0_8 = arith.constant 0 : index
    %16 = vector.load %arg4[%c0_7, %c0_8] : memref<16x64xf32, #tpu.memory_space<vmem>>, vector<16x64xf32>
    tpu.vector_store %arg4[%c0_7, %c0_8], %15 {strides = array<i32>} : memref<16x64xf32, #tpu.memory_space<vmem>>, vector<16x64xf32>,
    return
  }
  func.func @transform_0(%arg0: i32) -> (i32, i32) {
    %c0_i32 = arith.constant 0 : i32
    %c0_i32_0 = arith.constant 0 : i32
    return %arg0, %c0_i32 : i32, i32
  }
  func.func @transform_1(%arg0: i32) -> (i32, i32) {
    %c0_i32 = arith.constant 0 : i32
    %c0_i32_0 = arith.constant 0 : i32
    %c0_i32_1 = arith.constant 0 : i32
    return %c0_i32, %c0_i32_0 : i32, i32
  }
  func.func @transform_2(%arg0: i32) -> (i32, i32) {
    %c0_i32 = arith.constant 0 : i32
    %c0_i32_0 = arith.constant 0 : i32
    %c0_i32_1 = arith.constant 0 : i32
    return %c0_i32, %c0_i32_0 : i32, i32
  }
  func.func @transform_3(%arg0: i32) -> (i32, i32) {
    %c0_i32 = arith.constant 0 : i32
    %c0_i32_0 = arith.constant 0 : i32
    return %arg0, %c0_i32 : i32, i32
  }
}

</mosaic_0001>

<bundles_post_ra>
// kernel: tpu_custom_call.1
= control target key start
LH: loop header
LB: loop body
LE: loop exit
PB: predicated region body
PF: predicated region fallthrough
CT: control target
= control target key end

     0   :  { %vm32_vm0 = vcmask 261120   ;;  %s337_s0 = inlined_call_operand.vmem [shape: f32[16,32], index: 0, kind: input, shape index: {}]   ;;  %s338_s1 = inlined_call_operand.vmem [shape: f32[64,32], index: 1, kind: input, shape index: {}]   ;;  %s339_s2 = inlined_call_operand.vmem [shape: f32[1,64], index: 2, kind: input, shape index: {}]   ;;  %s340_s3 = inlined_call_operand.hbm [shape: f32[16,64], index: 3, kind: output, shape index: {}]  }
   0x1   :  { %v24_v0 = vld [vmem:[%s338_s1 + $0x38] sm:$0xff]  ;;  %v23_v1 = vld [vmem:[%s338_s1 + $0x30] sm:$0xff]  ;;  %v15_v2 = vld [vmem:[%s337_s0] sm:$0xff] }
   0x2   :  { %202 = vmatprep.subr.msk.mxu0 %vm32_vm0, %v24_v0  ;;  %218 = vmatprep.mubr.msk.f32.mxu0 %vm32_vm0, %v15_v2 }
   0x3   :  { %203 = vmatpush3.xpose.msk.msra.mxu0 %vm32_vm0, %v24_v0 }
   0x4   :  { %204 = vmatprep.subr.msk.mxu0 %vm32_vm0, %v23_v1 }
   0x5   :  { %8 = vsyncpa [#allocation3], 0  ;;  %v22_v3 = vld [vmem:[%s338_s1 + $0x28] sm:$0xff]  ;;  %v21_v4 = vld [vmem:[%s338_s1 + $0x20] sm:$0xff]  ;;  %vm138_vm1 = vcmask 523264  }
   0x6   :  { %v20_v5 = vld [vmem:[%s338_s1 + $0x18] sm:$0xff]  ;;  %v19_v6 = vld [vmem:[%s338_s1 + $0x10] sm:$0xff]  ;;  %v18_v7 = vld [vmem:[%s338_s1 + $0x8] sm:$0xff] }
   0x7   :  { %205 = vmatpush3.xpose.msk.msra.mxu0 %vm32_vm0, %v23_v1  ;;  %v17_v8 = vld [vmem:[%s338_s1] sm:$0xff]  ;;  %v16_v9 = vld [vmem:[%s337_s0 + $0x8] sm:$0xff]  ;;  %s254_s0 = smov [#allocation2]  }
   0x8   :  { %206 = vmatprep.subr.msk.mxu0 %vm32_vm0, %v22_v3  ;;  %v181_v11 = vld [vmem:[%s339_s2] ss:$0 sm:$0xff]  ;;  %s170_s1 = sshll.u32 %s254_s0, 4  ;;  %s171_s1 = int_to_ptr.vmem [resolvable:$true] %s170_s1 }
   0x9   :  { %s232_s2 = scalar_lea.vmem %s171_s1, 256  ;;  %p237_p1 = scmp.lt.s32.totalorder %s171_s1, %s171_s1 }
   0xa   :  { %p233_p0 = scmp.ne.s32.totalorder %s171_s1, %s232_s2  ;;  %p238_p2 = scmp.lt.s32.totalorder %s232_s2, %s232_s2 }
   0xb   :  { %207 = vmatpush3.xpose.msk.msra.mxu0 %vm32_vm0, %v22_v3 }
   0xc   :  { %208 = vmatprep.subr.msk.mxu0 %vm32_vm0, %v21_v4  ;;  %p239_p3 = por %p238_p2, %p237_p1 }
   0xe   :  { %p240_p4 = pnand %p239_p3, %p233_p0 }
   0xf   :  { %209 = vmatpush3.xpose.msk.msra.mxu0 %vm32_vm0, %v21_v4 }
  0x10   :  { %210 = vmatprep.subr.msk.mxu0 %vm32_vm0, %v20_v5 }
  0x13   :  { %211 = vmatpush3.xpose.msk.msra.mxu0 %vm32_vm0, %v20_v5 }
  0x14   :  { %212 = vmatprep.subr.msk.mxu0 %vm32_vm0, %v19_v6 }
  0x17   :  { %213 = vmatpush3.xpose.msk.msra.mxu0 %vm32_vm0, %v19_v6 }
  0x18   :  { %214 = vmatprep.subr.msk.mxu0 %vm32_vm0, %v18_v7 }
  0x1b   :  { %215 = vmatpush3.xpose.msk.msra.mxu0 %vm32_vm0, %v18_v7 }
  0x1c   :  { %216 = vmatprep.subr.msk.mxu0 %vm32_vm0, %v17_v8 }
  0x1f   :  { %217 = vmatpush3.xpose.msk.msra.mxu0 %vm32_vm0, %v17_v8 }
  0x22   :  { %219 = vmatmul.mubr.msk.f32.vlgmr.msra.gmra.mxu0 %vm32_vm0, %v16_v9 }
  0xe2   :  { %v220_v10 = vpop.f32.mrf.mxu0 }
  0xe3   :  { %v135_v14 = vadd.f32 %v220_v10, %v181_v11 }
  0xe4   :  { %v129_v12 = vpop.f32.mrf.mxu0 }
  0xe5   :  { %v130_v13 = vadd.f32 %v181_v11, %v129_v12  ;;  %v142_v16 = vsel %vm138_vm1, %v135_v14, -inf }
  0xe7   :  { %v139_v15 = vsel %vm138_vm1, %v130_v13, -inf }
  0xe8   :  { %140 = vmax.xlane.f32.xlu0 %v139_v15 }
  0xec   :  { %143 = vmax.xlane.f32.xlu0 %v142_v16 }
 0x171   :  { %v141_v17 = vpop.xlane.xlu0 %140 }
 0x172   :  { %v145_v18 = vsub.f32 %v130_v13, %v141_v17 }
 0x174   :  { %v147_v19 = vmul.f32 1.442695, %v145_v18 }
 0x175   :  { %v144_v20 = vpop.xlane.xlu0 %143 }
 0x176   :  { %224 = vpow2.f32 %v147_v19  ;;  %v146_v21 = vsub.f32 %v135_v14, %v144_v20 }
 0x178   :  { %v149_v22 = vmul.f32 1.442695, %v146_v21 }
 0x17a   :  { %226 = vpow2.f32 %v149_v22 }
 0x183   :  { %v225_v23 = vpop.eup %224 }
 0x184   :  { %v151_v24 = vsel %vm138_vm1, %v225_v23, 0.0 }
 0x185   :  { %152 = vadd.xlane.f32.xlu1 %v151_v24 }
 0x187   :  { %v227_v25 = vpop.eup %226 }
 0x188   :  { %v154_v26 = vsel %vm138_vm1, %v227_v25, 0.0 }
 0x189   :  { %155 = vadd.xlane.f32.xlu1 %v154_v26 }
 0x20e   :  { %v153_v27 = vpop.xlane.xlu1 %152 }
 0x20f   :  { %228 = vlog2.f32 %v153_v27 }
 0x212   :  { %v156_v28 = vpop.xlane.xlu1 %155 }
 0x213   :  { %230 = vlog2.f32 %v156_v28 }
 0x21c   :  { %v229_v29 = vpop.eup %228 }
 0x21d   :  { %v158_v30 = vmul.f32 0.6931472, %v229_v29 }
 0x21f   :  { %v161_v31 = vsub.f32 %v145_v18, %v158_v30 }
 0x220   :  { %v231_v32 = vpop.eup %230 }
 0x221   :  { %163 = vst.msk [vmem:[#allocation2] sm:$0xff] %vm138_vm1, %v161_v31  ;;  %v160_v33 = vmul.f32 0.6931472, %v231_v32 }
 0x223   :  { %v162_v34 = vsub.f32 %v146_v21, %v160_v33 }
 0x225   :  { %164 = vst.msk [vmem:[#allocation2 + $0x8] sm:$0xff] %vm138_vm1, %v162_v34 }
 0x226   :  { %243 = shalt.err (!%p240_p4)
}
 0x227   :  { %s255_s7 = smov 128   ;;  %s256_s8 = smov 8  }
 0x228   :  { %176 = dma.vmem_to_hbm [thread:$0]  %s171_s1, 256, %s340_s3, [#allocation3], %s255_s7, %s255_s7, %s256_s8  }
 0x229   :  { %252 = dma.done.wait [#allocation3], 256  }
 0x22a   :  { %253 = vsyncadd [#allocation3], 4294967040 }
 0x22b   :  { %180 = vsyncpa [#allocation3], 1 }

</bundles_post_ra>
